<compile_context>
chip_gen: v7x
topology: tpu7x:2x2x1
jax: 0.10.0
libtpu: 0.0.40
codegen_flags: <defaults>
</compile_context>

<pallas_src>
import functools

import jax
import jax.numpy as jnp
from jax import lax
from jax.experimental import pallas as pl
from jax.experimental.pallas import tpu as pltpu


def _round_up(x, m):
    return ((x + m - 1) // m) * m


def _tpu_vmem_capacity_bytes():
    """Physical per-core VMEM (128 MiB on v5e/v6e, 64 MiB on v7x)."""
    try:
        info_fn = getattr(pltpu, "get_tpu_info", None)
        if info_fn is not None:
            cap = getattr(info_fn(), "vmem_capacity_bytes", None)
            if cap:
                return int(cap)
    except Exception:
        pass
    return 64 * 1024 * 1024  # conservative default (v7x per-TC)


def _pick_tk(Kp, cap):
    """Largest multiple-of-128 divisor of Kp that is <= cap (no K padding
    beyond the 128 alignment).  Kp=640 -> 640 (full residency); Kp=4608 with
    cap 2048 -> 1536 (3 K steps, zero waste)."""
    best = 128
    t = 128
    while t <= min(Kp, cap):
        if Kp % t == 0:
            best = t
        t += 128
    return best


def _vmem_footprint_bytes(TM, TK, Cp, res_itemsize, out_itemsize):
    patches = 2 * TM * TK * 2          # bf16, double-buffered
    weight = 2 * TK * Cp * 2           # bf16, double-buffered
    bias = 2 * Cp * 4                  # f32 (1, Cp), double-buffered
    resid = 2 * TM * Cp * res_itemsize
    out = 2 * TM * Cp * out_itemsize
    acc = TM * Cp * 4                  # f32 accumulator scratch
    return patches + weight + bias + resid + out + acc


# ----------------------------------------------------------------------------
# Pallas kernels: K-tiled matmul with f32 VMEM accumulator; bias (folded BN),
# optional residual add and ReLU fused into the finalize step.
# ----------------------------------------------------------------------------
def _matmul_bias_kernel(p_ref, w_ref, b_ref, o_ref, acc_ref, *, relu):
    k = pl.program_id(1)

    @pl.when(k == 0)
    def _():
        acc_ref[...] = jnp.zeros_like(acc_ref)

    acc_ref[...] += jnp.dot(p_ref[...], w_ref[...],
                            preferred_element_type=jnp.float32)

    @pl.when(k == pl.num_programs(1) - 1)
    def _():
        y = acc_ref[...] + b_ref[...]
        if relu:
            y = jnp.maximum(y, 0.0)
        o_ref[...] = y.astype(o_ref.dtype)


def _matmul_bias_res_kernel(p_ref, w_ref, b_ref, r_ref, o_ref, acc_ref,
                            *, relu):
    k = pl.program_id(1)

    @pl.when(k == 0)
    def _():
        acc_ref[...] = jnp.zeros_like(acc_ref)

    acc_ref[...] += jnp.dot(p_ref[...], w_ref[...],
                            preferred_element_type=jnp.float32)

    @pl.when(k == pl.num_programs(1) - 1)
    def _():
        y = acc_ref[...] + b_ref[...] + r_ref[...].astype(jnp.float32)
        if relu:
            y = jnp.maximum(y, 0.0)
        o_ref[...] = y.astype(o_ref.dtype)


def conv_bn_pallas(patches, w_pad, bias_pad, out_channels,
                   residual=None, relu=True, out_dtype=jnp.bfloat16):
    """patches: (M, K) bf16 im2col matrix.  w_pad: (Kp, Cp) bf16 with Kp, Cp
    multiples of 128 (zero-padded, BN scale already folded in).  bias_pad:
    (1, Cp) f32 with zeros in padded channels.  residual: optional (M, C)
    bf16/f32.  Returns (M, out_channels) array of `out_dtype`."""
    M, K = patches.shape
    Kp, Cp = w_pad.shape
    assert Kp % 128 == 0 and Cp % 128 == 0 and K <= Kp

    # Generation-gated VMEM budget + tile caps (v5e/v6e: 128 MiB, v7x: 64 MiB).
    vmem_cap = _tpu_vmem_capacity_bytes()
    if vmem_cap >= 100 * 1024 * 1024:
        vmem_limit = 96 * 1024 * 1024
        tm_cap = 2048
    else:
        vmem_limit = 40 * 1024 * 1024   # leave headroom for Mosaic scratch
        tm_cap = 1024
    budget = int(vmem_limit * 0.85)

    TK = _pick_tk(Kp, cap=2048)

    out_itemsize = jnp.dtype(out_dtype).itemsize
    res_itemsize = (jnp.dtype(residual.dtype).itemsize
                    if residual is not None else 0)

    # M tile selection: as large as fits, but keep >= 2 tiles so v7x's two
    # TensorCores both get work on the "parallel" M axis.
    M8 = _round_up(M, 8)
    TM = min(tm_cap, M8)
    if M8 > 8 and _round_up(M8, TM) // TM < 2:
        TM = _round_up(M8 // 2, 8)
    while TM > 8 and _vmem_footprint_bytes(TM, TK, Cp, res_itemsize,
                                           out_itemsize) > budget:
        TM = max(8, _round_up(TM // 2, 8))
    Mp = _round_up(M, TM)

    # Pad patches to (Mp, Kp) in bf16 (no extra f32 convert pass).
    p = jnp.pad(patches.astype(jnp.bfloat16), ((0, Mp - M), (0, Kp - K)))

    in_specs = [
        pl.BlockSpec((TM, TK), lambda i, k: (i, k)),   # patches tile
        pl.BlockSpec((TK, Cp), lambda i, k: (k, 0)),   # weight tile
        pl.BlockSpec((1, Cp), lambda i, k: (0, 0)),    # folded-BN bias
    ]
    args = [p, w_pad, bias_pad]

    if residual is None:
        kernel = functools.partial(_matmul_bias_kernel, relu=relu)
        res_bytes = 0
    else:
        Mr, Cr = residual.shape
        r = jnp.pad(residual, ((0, Mp - Mr), (0, Cp - Cr)))
        in_specs.append(pl.BlockSpec((TM, Cp), lambda i, k: (i, 0)))
        args.append(r)
        kernel = functools.partial(_matmul_bias_res_kernel, relu=relu)
        res_bytes = Mp * Cp * res_itemsize

    n_m_tiles = Mp // TM
    n_k_tiles = Kp // TK
    weight_bytes = Kp * Cp * 2 * (n_m_tiles if n_k_tiles > 1 else 1)
    cost = pl.CostEstimate(
        flops=2 * Mp * Kp * Cp,
        transcendentals=0,
        bytes_accessed=(Mp * Kp * 2 + weight_bytes + Mp * Cp * out_itemsize
                        + res_bytes),
    )

    out = pl.pallas_call(
        kernel,
        out_shape=jax.ShapeDtypeStruct((Mp, Cp), out_dtype),
        grid=(n_m_tiles, n_k_tiles),
        in_specs=in_specs,
        out_specs=pl.BlockSpec((TM, Cp), lambda i, k: (i, 0)),
        scratch_shapes=[pltpu.VMEM((TM, Cp), jnp.float32)],
        compiler_params=pltpu.CompilerParams(
            dimension_semantics=("parallel", "arbitrary"),
            vmem_limit_bytes=vmem_limit,
        ),
        cost_estimate=cost,
    )(*args)

    return out[:M, :out_channels]


# ----------------------------------------------------------------------------
# Plain-JAX glue: im2col, weight reshaping, BN folding, one-time preparation
# ----------------------------------------------------------------------------
def im2col(x_nhwc, ksize, stride, padding):
    """x: (N, H, W, C) -> patches (N*Ho*Wo, ksize*ksize*C), plus Ho, Wo.
    Patch channel ordering: ((kh * ksize + kw) * C + c).  Dtype preserved."""
    N, H, W, C = x_nhwc.shape
    xp = jnp.pad(x_nhwc, ((0, 0), (padding, padding), (padding, padding), (0, 0)))
    Ho = (H + 2 * padding - ksize) // stride + 1
    Wo = (W + 2 * padding - ksize) // stride + 1
    cols = []
    for dh in range(ksize):
        for dw in range(ksize):
            cols.append(xp[:, dh:dh + stride * Ho:stride,
                           dw:dw + stride * Wo:stride, :])
    patches = jnp.concatenate(cols, axis=-1)  # (N, Ho, Wo, k*k*C)
    return patches.reshape(N * Ho * Wo, ksize * ksize * C), Ho, Wo


def weight_to_matrix(w_oihw):
    """(Cout, Cin, kh, kw) -> (kh*kw*Cin, Cout), matching im2col ordering."""
    Cout, Cin, kh, kw = w_oihw.shape
    return jnp.transpose(w_oihw, (2, 3, 1, 0)).reshape(kh * kw * Cin, Cout)


def fold_bn(gamma, beta, mean, var, eps=1e-5):
    scale = gamma / jnp.sqrt(var + eps)
    bias = beta - mean * scale
    return scale, bias


def _prepare_conv(w_oihw, bn):
    """Fold BN (scale into the weight columns, bias kept separately); reshape
    the weight to a lane-dense 128-padded (Kp, Cp) bf16 matrix.  K is padded
    only to a multiple of 128 (no rounding up to a TK multiple)."""
    w_mat = weight_to_matrix(w_oihw)                 # (K, C) f32
    K, C = w_mat.shape
    scale, bias = fold_bn(*bn)
    w_mat = w_mat * scale[None, :]                   # fold BN scale into W
    Kp = _round_up(K, 128)
    Cp = _round_up(C, 128)
    return {
        "w": jnp.pad(w_mat, ((0, Kp - K), (0, Cp - C))).astype(jnp.bfloat16),
        "b": jnp.pad(bias, (0, Cp - C)).reshape(1, Cp).astype(jnp.float32),
        "C": C,
    }


def prepare_params(params, in_channels, out_channels, stride):
    """One-time preparation (hoisted out of the forward hot path)."""
    prepared = {
        "conv1": _prepare_conv(params["w1"], params["bn1"]),
        "conv2": _prepare_conv(params["w2"], params["bn2"]),
        "stride": stride,
        "out_channels": out_channels,
        "has_downsample": (stride != 1) or (in_channels != out_channels),
    }
    if prepared["has_downsample"]:
        prepared["convd"] = _prepare_conv(params["wd"], params["bnd"])
    return prepared


# ----------------------------------------------------------------------------
# BasicBlock forward (NCHW in, NCHW out — same as the PyTorch module)
# ----------------------------------------------------------------------------
def basic_block_forward(x_nchw, prepared):
    # NHWC + bf16 internally: halves activation HBM traffic (im2col 9x matrix,
    # conv1 writeback, conv2 re-read, residual stream).
    x = jnp.transpose(x_nchw, (0, 2, 3, 1)).astype(jnp.bfloat16)
    N, H, W, Cin = x.shape
    stride = prepared["stride"]
    Cout = prepared["out_channels"]

    # conv1 (3x3, stride) + bn1 + relu -> bf16 intermediate
    p1, Ho, Wo = im2col(x, 3, stride, 1)
    c1 = prepared["conv1"]
    out1 = conv_bn_pallas(p1, c1["w"], c1["b"], Cout, relu=True,
                          out_dtype=jnp.bfloat16)
    out1_nhwc = out1.reshape(N, Ho, Wo, Cout)

    # identity / downsample branch: a 1x1 strided conv needs no im2col — it is
    # just a strided spatial subsample of x reshaped to (M, Cin).
    if prepared["has_downsample"]:
        cd = prepared["convd"]
        xs = x[:, ::stride, ::stride, :].reshape(N * Ho * Wo, Cin)
        identity = conv_bn_pallas(xs, cd["w"], cd["b"], Cout, relu=False,
                                  out_dtype=jnp.bfloat16)
    else:
        identity = x.reshape(N * H * W, Cin)

    # conv2 (3x3, stride 1) + bn2 + residual add + relu (all fused in kernel)
    p2, _, _ = im2col(out1_nhwc, 3, 1, 1)
    c2 = prepared["conv2"]
    out2 = conv_bn_pallas(p2, c2["w"], c2["b"], Cout,
                          residual=identity, relu=True, out_dtype=jnp.float32)

    # NCHW output to match the PyTorch module; NHWC-native consumers can
    # skip this transpose.
    return jnp.transpose(out2.reshape(N, Ho, Wo, Cout), (0, 3, 1, 2))


# ----------------------------------------------------------------------------
# Pure-JAX reference (lax.conv, f32) for correctness checking
# ----------------------------------------------------------------------------
def _conv_ref(x_nhwc, w_oihw, stride, pad):
    w_hwio = jnp.transpose(w_oihw, (2, 3, 1, 0))
    return lax.conv_general_dilated(
        x_nhwc, w_hwio, (stride, stride), [(pad, pad), (pad, pad)],
        dimension_numbers=("NHWC", "HWIO", "NHWC"))


def basic_block_ref(x_nchw, params, stride):
    x = jnp.transpose(x_nchw, (0, 2, 3, 1)).astype(jnp.float32)
    Cin = x.shape[-1]
    Cout = params["w1"].shape[0]
    has_downsample = (stride != 1) or (Cin != Cout)

    s1, b1 = fold_bn(*params["bn1"])
    out = _conv_ref(x, params["w1"], stride, 1) * s1 + b1
    out = jnp.maximum(out, 0.0)
    s2, b2 = fold_bn(*params["bn2"])
    out = _conv_ref(out, params["w2"], 1, 1) * s2 + b2
    if has_downsample:
        sd, bd = fold_bn(*params["bnd"])
        ident = _conv_ref(x, params["wd"], stride, 0) * sd + bd
    else:
        ident = x
    out = jnp.maximum(out + ident, 0.0)
    return jnp.transpose(out, (0, 3, 1, 2))


# ----------------------------------------------------------------------------
# Deterministic parameter construction
# ----------------------------------------------------------------------------
def make_params(key, in_channels, out_channels):
    ks = jax.random.split(key, 10)

    def bn_params(k, c):
        k1, k2, k3, k4 = jax.random.split(k, 4)
        gamma = jax.random.uniform(k1, (c,), jnp.float32, 0.5, 1.5)
        beta = 0.1 * jax.random.normal(k2, (c,), jnp.float32)
        mean = 0.1 * jax.random.normal(k3, (c,), jnp.float32)
        var = jax.random.uniform(k4, (c,), jnp.float32, 0.5, 1.5)
        return (gamma, beta, mean, var)

    return {
        "w1": 0.1 * jax.random.normal(ks[0], (out_channels, in_channels, 3, 3), jnp.float32),
        "bn1": bn_params(ks[1], out_channels),
        "w2": 0.1 * jax.random.normal(ks[2], (out_channels, out_channels, 3, 3), jnp.float32),
        "bn2": bn_params(ks[3], out_channels),
        "wd": 0.1 * jax.random.normal(ks[4], (out_channels, in_channels, 1, 1), jnp.float32),
        "bnd": bn_params(ks[5], out_channels),
    }


if __name__ == "__main__":
    key = jax.random.PRNGKey(0)
    k_x, k_p = jax.random.split(key)

    # Small shapes: batch=2, in_channels=4, out_channels=8, spatial=16, stride=2
    # (stride=2 / channel change exercises the downsample branch).
    N, Cin, Cout, H, W, stride = 2, 4, 8, 16, 16, 2
    x = jax.random.normal(k_x, (N, Cin, H, W), jnp.float32)
    params = make_params(k_p, Cin, Cout)

    # Hoisted one-time prep: BN folding (scale into weights), weight
    # reshape/128-pad, bf16 cast become jit constants of the forward.
    prepared = prepare_params(params, Cin, Cout, stride)
    fwd = jax.jit(functools.partial(basic_block_forward, prepared=prepared))

    out = jax.block_until_ready(fwd(x))
    ref = jax.block_until_ready(basic_block_ref(x, params, stride))

    assert out.shape == (N, Cout, H // stride, W // stride), out.shape
    err = float(jnp.max(jnp.abs(out - ref)))
    # bf16 activations/weights with f32 accumulation -> relaxed tolerance vs
    # the all-f32 reference.
    assert err < 5e-2, err

    print("KERNEL_OK")
</pallas_src>

<mosaic_0001>
module attributes {stable_mosaic.version = 11 : i64} {
  func.func @_matmul_bias_kernel(%arg0: i32, %arg1: i32, %arg2: memref<64x128xbf16, #tpu.memory_space<vmem>>, %arg3: memref<128x128xbf16, #tpu.memory_space<vmem>>, %arg4: memref<1x128xf32, #tpu.memory_space<vmem>>, %arg5: memref<64x128xbf16, #tpu.memory_space<vmem>>, %arg6: memref<64x128xf32, #tpu.memory_space<vmem>>) attributes {dimension_semantics = [#tpu.dimension_semantics<parallel>, #tpu.dimension_semantics<arbitrary>], iteration_bounds = array<i64: 2, 1>, scalar_prefetch = 0 : i64, scratch_operands = 1 : i64, tpu.core_type = #tpu.core_type<tc>, window_params = [{transform_indices = @transform_0, window_bounds = array<i64: 64, 128>}, {transform_indices = @transform_1, window_bounds = array<i64: 128, 128>}, {pipeline_mode = #tpu.pipeline_mode<synchronous>, transform_indices = @transform_2, window_bounds = array<i64: 1, 128>}, {transform_indices = @transform_3, window_bounds = array<i64: 64, 128>}]} {
    %c0_i32 = arith.constant 0 : i32
    %0 = arith.cmpi eq, %arg1, %c0_i32 : i32
    %1 = arith.extui %0 : i1 to i32
    %c0_i32_0 = arith.constant 0 : i32
    %2 = arith.cmpi ne, %1, %c0_i32_0 : i32
    scf.if %2 {
      %cst_10 = arith.constant 0.000000e+00 : f32
      %12 = vector.broadcast %cst_10 : f32 to vector<64x128xf32>
      %c0_11 = arith.constant 0 : index
      %c0_12 = arith.constant 0 : index
      %13 = vector.load %arg6[%c0_11, %c0_12] : memref<64x128xf32, #tpu.memory_space<vmem>>, vector<64x128xf32>
      tpu.vector_store %arg6[%c0_11, %c0_12], %12 {strides = array<i32>} : memref<64x128xf32, #tpu.memory_space<vmem>>, vector<64x128xf32>,
    } else {
    }
    %c0 = arith.constant 0 : index
    %c0_1 = arith.constant 0 : index
    %3 = vector.load %arg6[%c0, %c0_1] : memref<64x128xf32, #tpu.memory_space<vmem>>, vector<64x128xf32>
    %c0_2 = arith.constant 0 : index
    %c0_3 = arith.constant 0 : index
    %4 = vector.load %arg2[%c0_2, %c0_3] : memref<64x128xbf16, #tpu.memory_space<vmem>>, vector<64x128xbf16>
    %c0_4 = arith.constant 0 : index
    %c0_5 = arith.constant 0 : index
    %5 = vector.load %arg3[%c0_4, %c0_5] : memref<128x128xbf16, #tpu.memory_space<vmem>>, vector<128x128xbf16>
    %cst = arith.constant dense<0.000000e+00> : vector<64x128xf32>
    %6 = tpu.matmul %4, %5, %cst {dimension_numbers = #tpu.dot_dimension_numbers<[1], [0], [0], [1], [0, 0, 1, 1], [], []>} : vector<64x128xbf16>, vector<128x128xbf16>, vector<64x128xf32> -> vector<64x128xf32>
    %7 = arith.addf %3, %6 : vector<64x128xf32>
    %c0_6 = arith.constant 0 : index
    %c0_7 = arith.constant 0 : index
    %8 = vector.load %arg6[%c0_6, %c0_7] : memref<64x128xf32, #tpu.memory_space<vmem>>, vector<64x128xf32>
    tpu.vector_store %arg6[%c0_6, %c0_7], %7 {strides = array<i32>} : memref<64x128xf32, #tpu.memory_space<vmem>>, vector<64x128xf32>,
    %c0_i32_8 = arith.constant 0 : i32
    %9 = arith.cmpi eq, %arg1, %c0_i32_8 : i32
    %10 = arith.extui %9 : i1 to i32
    %c0_i32_9 = arith.constant 0 : i32
    %11 = arith.cmpi ne, %10, %c0_i32_9 : i32
    scf.if %11 {
      %c0_10 = arith.constant 0 : index
      %c0_11 = arith.constant 0 : index
      %12 = vector.load %arg6[%c0_10, %c0_11] : memref<64x128xf32, #tpu.memory_space<vmem>>, vector<64x128xf32>
      %c0_12 = arith.constant 0 : index
      %c0_13 = arith.constant 0 : index
      %13 = vector.load %arg4[%c0_12, %c0_13] : memref<1x128xf32, #tpu.memory_space<vmem>>, vector<1x128xf32>
      %14 = vector.broadcast %13 : vector<1x128xf32> to vector<64x128xf32>
      %15 = arith.addf %12, %14 : vector<64x128xf32>
      %cst_14 = arith.constant 0.000000e+00 : f32
      %16 = vector.broadcast %cst_14 : f32 to vector<64x128xf32>
      %17 = arith.maximumf %15, %16 : vector<64x128xf32>
      %18 = arith.truncf %17 : vector<64x128xf32> to vector<64x128xbf16>
      %c0_15 = arith.constant 0 : index
      %c0_16 = arith.constant 0 : index
      %19 = vector.load %arg5[%c0_15, %c0_16] : memref<64x128xbf16, #tpu.memory_space<vmem>>, vector<64x128xbf16>
      tpu.vector_store %arg5[%c0_15, %c0_16], %18 {strides = array<i32>} : memref<64x128xbf16, #tpu.memory_space<vmem>>, vector<64x128xbf16>,
    } else {
    }
    return
  }
  func.func @transform_0(%arg0: i32, %arg1: i32) -> (i32, i32) {
    %c0_i32 = arith.constant 0 : i32
    return %arg0, %arg1 : i32, i32
  }
  func.func @transform_1(%arg0: i32, %arg1: i32) -> (i32, i32) {
    %c0_i32 = arith.constant 0 : i32
    %c0_i32_0 = arith.constant 0 : i32
    return %arg1, %c0_i32 : i32, i32
  }
  func.func @transform_2(%arg0: i32, %arg1: i32) -> (i32, i32) {
    %c0_i32 = arith.constant 0 : i32
    %c0_i32_0 = arith.constant 0 : i32
    %c0_i32_1 = arith.constant 0 : i32
    return %c0_i32, %c0_i32_0 : i32, i32
  }
  func.func @transform_3(%arg0: i32, %arg1: i32) -> (i32, i32) {
    %c0_i32 = arith.constant 0 : i32
    %c0_i32_0 = arith.constant 0 : i32
    return %arg0, %c0_i32 : i32, i32
  }
}

module attributes {stable_mosaic.version = 11 : i64} {
  func.func @_matmul_bias_kernel(%arg0: i32, %arg1: i32, %arg2: memref<64x128xbf16, #tpu.memory_space<vmem>>, %arg3: memref<128x128xbf16, #tpu.memory_space<vmem>>, %arg4: memref<1x128xf32, #tpu.memory_space<vmem>>, %arg5: memref<64x128xbf16, #tpu.memory_space<vmem>>, %arg6: memref<64x128xf32, #tpu.memory_space<vmem>>) attributes {dimension_semantics = [#tpu.dimension_semantics<parallel>, #tpu.dimension_semantics<arbitrary>], iteration_bounds = array<i64: 2, 1>, scalar_prefetch = 0 : i64, scratch_operands = 1 : i64, tpu.core_type = #tpu.core_type<tc>, window_params = [{transform_indices = @transform_0, window_bounds = array<i64: 64, 128>}, {transform_indices = @transform_1, window_bounds = array<i64: 128, 128>}, {pipeline_mode = #tpu.pipeline_mode<synchronous>, transform_indices = @transform_2, window_bounds = array<i64: 1, 128>}, {transform_indices = @transform_3, window_bounds = array<i64: 64, 128>}]} {
    %c0_i32 = arith.constant 0 : i32
    %0 = arith.cmpi eq, %arg1, %c0_i32 : i32
    %1 = arith.extui %0 : i1 to i32
    %c0_i32_0 = arith.constant 0 : i32
    %2 = arith.cmpi ne, %1, %c0_i32_0 : i32
    scf.if %2 {
      %cst_10 = arith.constant 0.000000e+00 : f32
      %12 = vector.broadcast %cst_10 : f32 to vector<64x128xf32>
      %c0_11 = arith.constant 0 : index
      %c0_12 = arith.constant 0 : index
      %13 = vector.load %arg6[%c0_11, %c0_12] : memref<64x128xf32, #tpu.memory_space<vmem>>, vector<64x128xf32>
      tpu.vector_store %arg6[%c0_11, %c0_12], %12 {strides = array<i32>} : memref<64x128xf32, #tpu.memory_space<vmem>>, vector<64x128xf32>,
    } else {
    }
    %c0 = arith.constant 0 : index
    %c0_1 = arith.constant 0 : index
    %3 = vector.load %arg6[%c0, %c0_1] : memref<64x128xf32, #tpu.memory_space<vmem>>, vector<64x128xf32>
    %c0_2 = arith.constant 0 : index
    %c0_3 = arith.constant 0 : index
    %4 = vector.load %arg2[%c0_2, %c0_3] : memref<64x128xbf16, #tpu.memory_space<vmem>>, vector<64x128xbf16>
    %c0_4 = arith.constant 0 : index
    %c0_5 = arith.constant 0 : index
    %5 = vector.load %arg3[%c0_4, %c0_5] : memref<128x128xbf16, #tpu.memory_space<vmem>>, vector<128x128xbf16>
    %cst = arith.constant dense<0.000000e+00> : vector<64x128xf32>
    %6 = tpu.matmul %4, %5, %cst {dimension_numbers = #tpu.dot_dimension_numbers<[1], [0], [0], [1], [0, 0, 1, 1], [], []>} : vector<64x128xbf16>, vector<128x128xbf16>, vector<64x128xf32> -> vector<64x128xf32>
    %7 = arith.addf %3, %6 : vector<64x128xf32>
    %c0_6 = arith.constant 0 : index
    %c0_7 = arith.constant 0 : index
    %8 = vector.load %arg6[%c0_6, %c0_7] : memref<64x128xf32, #tpu.memory_space<vmem>>, vector<64x128xf32>
    tpu.vector_store %arg6[%c0_6, %c0_7], %7 {strides = array<i32>} : memref<64x128xf32, #tpu.memory_space<vmem>>, vector<64x128xf32>,
    %c0_i32_8 = arith.constant 0 : i32
    %9 = arith.cmpi eq, %arg1, %c0_i32_8 : i32
    %10 = arith.extui %9 : i1 to i32
    %c0_i32_9 = arith.constant 0 : i32
    %11 = arith.cmpi ne, %10, %c0_i32_9 : i32
    scf.if %11 {
      %c0_10 = arith.constant 0 : index
      %c0_11 = arith.constant 0 : index
      %12 = vector.load %arg6[%c0_10, %c0_11] : memref<64x128xf32, #tpu.memory_space<vmem>>, vector<64x128xf32>
      %c0_12 = arith.constant 0 : index
      %c0_13 = arith.constant 0 : index
      %13 = vector.load %arg4[%c0_12, %c0_13] : memref<1x128xf32, #tpu.memory_space<vmem>>, vector<1x128xf32>
      %14 = vector.broadcast %13 : vector<1x128xf32> to vector<64x128xf32>
      %15 = arith.addf %12, %14 : vector<64x128xf32>
      %16 = arith.truncf %15 : vector<64x128xf32> to vector<64x128xbf16>
      %c0_14 = arith.constant 0 : index
      %c0_15 = arith.constant 0 : index
      %17 = vector.load %arg5[%c0_14, %c0_15] : memref<64x128xbf16, #tpu.memory_space<vmem>>, vector<64x128xbf16>
      tpu.vector_store %arg5[%c0_14, %c0_15], %16 {strides = array<i32>} : memref<64x128xbf16, #tpu.memory_space<vmem>>, vector<64x128xbf16>,
    } else {
    }
    return
  }
  func.func @transform_0(%arg0: i32, %arg1: i32) -> (i32, i32) {
    %c0_i32 = arith.constant 0 : i32
    return %arg0, %arg1 : i32, i32
  }
  func.func @transform_1(%arg0: i32, %arg1: i32) -> (i32, i32) {
    %c0_i32 = arith.constant 0 : i32
    %c0_i32_0 = arith.constant 0 : i32
    return %arg1, %c0_i32 : i32, i32
  }
  func.func @transform_2(%arg0: i32, %arg1: i32) -> (i32, i32) {
    %c0_i32 = arith.constant 0 : i32
    %c0_i32_0 = arith.constant 0 : i32
    %c0_i32_1 = arith.constant 0 : i32
    return %c0_i32, %c0_i32_0 : i32, i32
  }
  func.func @transform_3(%arg0: i32, %arg1: i32) -> (i32, i32) {
    %c0_i32 = arith.constant 0 : i32
    %c0_i32_0 = arith.constant 0 : i32
    return %arg0, %c0_i32 : i32, i32
  }
}

module attributes {stable_mosaic.version = 11 : i64} {
  func.func @_matmul_bias_res_kernel(%arg0: i32, %arg1: i32, %arg2: memref<64x128xbf16, #tpu.memory_space<vmem>>, %arg3: memref<128x128xbf16, #tpu.memory_space<vmem>>, %arg4: memref<1x128xf32, #tpu.memory_space<vmem>>, %arg5: memref<64x128xbf16, #tpu.memory_space<vmem>>, %arg6: memref<64x128xf32, #tpu.memory_space<vmem>>, %arg7: memref<64x128xf32, #tpu.memory_space<vmem>>) attributes {dimension_semantics = [#tpu.dimension_semantics<parallel>, #tpu.dimension_semantics<arbitrary>], iteration_bounds = array<i64: 2, 1>, scalar_prefetch = 0 : i64, scratch_operands = 1 : i64, tpu.core_type = #tpu.core_type<tc>, window_params = [{transform_indices = @transform_0, window_bounds = array<i64: 64, 128>}, {transform_indices = @transform_1, window_bounds = array<i64: 128, 128>}, {pipeline_mode = #tpu.pipeline_mode<synchronous>, transform_indices = @transform_2, window_bounds = array<i64: 1, 128>}, {transform_indices = @transform_3, window_bounds = array<i64: 64, 128>}, {transform_indices = @transform_4, window_bounds = array<i64: 64, 128>}]} {
    %c0_i32 = arith.constant 0 : i32
    %0 = arith.cmpi eq, %arg1, %c0_i32 : i32
    %1 = arith.extui %0 : i1 to i32
    %c0_i32_0 = arith.constant 0 : i32
    %2 = arith.cmpi ne, %1, %c0_i32_0 : i32
    scf.if %2 {
      %cst_10 = arith.constant 0.000000e+00 : f32
      %12 = vector.broadcast %cst_10 : f32 to vector<64x128xf32>
      %c0_11 = arith.constant 0 : index
      %c0_12 = arith.constant 0 : index
      %13 = vector.load %arg7[%c0_11, %c0_12] : memref<64x128xf32, #tpu.memory_space<vmem>>, vector<64x128xf32>
      tpu.vector_store %arg7[%c0_11, %c0_12], %12 {strides = array<i32>} : memref<64x128xf32, #tpu.memory_space<vmem>>, vector<64x128xf32>,
    } else {
    }
    %c0 = arith.constant 0 : index
    %c0_1 = arith.constant 0 : index
    %3 = vector.load %arg7[%c0, %c0_1] : memref<64x128xf32, #tpu.memory_space<vmem>>, vector<64x128xf32>
    %c0_2 = arith.constant 0 : index
    %c0_3 = arith.constant 0 : index
    %4 = vector.load %arg2[%c0_2, %c0_3] : memref<64x128xbf16, #tpu.memory_space<vmem>>, vector<64x128xbf16>
    %c0_4 = arith.constant 0 : index
    %c0_5 = arith.constant 0 : index
    %5 = vector.load %arg3[%c0_4, %c0_5] : memref<128x128xbf16, #tpu.memory_space<vmem>>, vector<128x128xbf16>
    %cst = arith.constant dense<0.000000e+00> : vector<64x128xf32>
    %6 = tpu.matmul %4, %5, %cst {dimension_numbers = #tpu.dot_dimension_numbers<[1], [0], [0], [1], [0, 0, 1, 1], [], []>} : vector<64x128xbf16>, vector<128x128xbf16>, vector<64x128xf32> -> vector<64x128xf32>
    %7 = arith.addf %3, %6 : vector<64x128xf32>
    %c0_6 = arith.constant 0 : index
    %c0_7 = arith.constant 0 : index
    %8 = vector.load %arg7[%c0_6, %c0_7] : memref<64x128xf32, #tpu.memory_space<vmem>>, vector<64x128xf32>
    tpu.vector_store %arg7[%c0_6, %c0_7], %7 {strides = array<i32>} : memref<64x128xf32, #tpu.memory_space<vmem>>, vector<64x128xf32>,
    %c0_i32_8 = arith.constant 0 : i32
    %9 = arith.cmpi eq, %arg1, %c0_i32_8 : i32
    %10 = arith.extui %9 : i1 to i32
    %c0_i32_9 = arith.constant 0 : i32
    %11 = arith.cmpi ne, %10, %c0_i32_9 : i32
    scf.if %11 {
      %c0_10 = arith.constant 0 : index
      %c0_11 = arith.constant 0 : index
      %12 = vector.load %arg7[%c0_10, %c0_11] : memref<64x128xf32, #tpu.memory_space<vmem>>, vector<64x128xf32>
      %c0_12 = arith.constant 0 : index
      %c0_13 = arith.constant 0 : index
      %13 = vector.load %arg4[%c0_12, %c0_13] : memref<1x128xf32, #tpu.memory_space<vmem>>, vector<1x128xf32>
      %14 = vector.broadcast %13 : vector<1x128xf32> to vector<64x128xf32>
      %15 = arith.addf %12, %14 : vector<64x128xf32>
      %c0_14 = arith.constant 0 : index
      %c0_15 = arith.constant 0 : index
      %16 = vector.load %arg5[%c0_14, %c0_15] : memref<64x128xbf16, #tpu.memory_space<vmem>>, vector<64x128xbf16>
      %17 = arith.extf %16 : vector<64x128xbf16> to vector<64x128xf32>
      %18 = arith.addf %15, %17 : vector<64x128xf32>
      %cst_16 = arith.constant 0.000000e+00 : f32
      %19 = vector.broadcast %cst_16 : f32 to vector<64x128xf32>
      %20 = arith.maximumf %18, %19 : vector<64x128xf32>
      %c0_17 = arith.constant 0 : index
      %c0_18 = arith.constant 0 : index
      %21 = vector.load %arg6[%c0_17, %c0_18] : memref<64x128xf32, #tpu.memory_space<vmem>>, vector<64x128xf32>
      tpu.vector_store %arg6[%c0_17, %c0_18], %20 {strides = array<i32>} : memref<64x128xf32, #tpu.memory_space<vmem>>, vector<64x128xf32>,
    } else {
    }
    return
  }
  func.func @transform_0(%arg0: i32, %arg1: i32) -> (i32, i32) {
    %c0_i32 = arith.constant 0 : i32
    return %arg0, %arg1 : i32, i32
  }
  func.func @transform_1(%arg0: i32, %arg1: i32) -> (i32, i32) {
    %c0_i32 = arith.constant 0 : i32
    %c0_i32_0 = arith.constant 0 : i32
    return %arg1, %c0_i32 : i32, i32
  }
  func.func @transform_2(%arg0: i32, %arg1: i32) -> (i32, i32) {
    %c0_i32 = arith.constant 0 : i32
    %c0_i32_0 = arith.constant 0 : i32
    %c0_i32_1 = arith.constant 0 : i32
    return %c0_i32, %c0_i32_0 : i32, i32
  }
  func.func @transform_3(%arg0: i32, %arg1: i32) -> (i32, i32) {
    %c0_i32 = arith.constant 0 : i32
    %c0_i32_0 = arith.constant 0 : i32
    return %arg0, %c0_i32 : i32, i32
  }
  func.func @transform_4(%arg0: i32, %arg1: i32) -> (i32, i32) {
    %c0_i32 = arith.constant 0 : i32
    %c0_i32_0 = arith.constant 0 : i32
    return %arg0, %c0_i32 : i32, i32
  }
}

</mosaic_0001>

<bundles_post_ra>
// kernel: basic_block_forward.3
= control target key start
LH: loop header
LB: loop body
LE: loop exit
PB: predicated region body
PF: predicated region fallthrough
CT: control target
= control target key end

     0   :  { %s770_s12 = smov 0   ;;  %s772_s13 = smov 0   ;;  %s843_s0 = inlined_call_operand.vmem [shape: bf16[128,128], index: 0, kind: input, shape index: {}]   ;;  %s844_s1 = inlined_call_operand.vmem [shape: bf16[128,128], index: 1, kind: input, shape index: {}]   ;;  %s845_s2 = inlined_call_operand.vmem [shape: f32[1,128], index: 2, kind: input, shape index: {}]   ;;  %s846_s3 = inlined_call_operand.vmem [shape: bf16[128,128], index: 3, kind: output, shape index: {}]  }
   0x1   :  { %s774_s14 = smov 0  }
   0x2 LB: > { %s25_s15 = sadd.s32 1, %s744_s13  ;;  %p579_p0 = scmp.ge.s32.totalorder %s748_s14, 1  ;;  %s748_s14 = sphi %s774_s14, %s13_s14   ;;  %s744_s13 = sphi %s772_s13, %s848_s13   ;;  %s740_s12 = sphi %s770_s12, %s847_s12  }
   0x3   : > { %p27_p1 = scmp.ge.s32.totalorder %s25_s15, 2  ;;  %p166_p2 = scmp.lt.s32.totalorder %s748_s14, 3 }
   0x5   : > { %s850_s15 = smov (%p27_p1, %s25_s15), 0  ;;  %p167_p3 = pnand %p579_p0, %p166_p2 }
   0x6   : > { %v714_v0 = vld [vmem:[%s844_s1] sm:$0xff] (!%p167_p3)   ;;  %s580_s18 = sshll.u32 (!%p167_p3), %s740_s12, 3  ;;  %v715_v1 = vld [vmem:[%s844_s1 + $0x8] sm:$0xff] (!%p167_p3)   ;;  %v716_v2 = vld [vmem:[%s844_s1 + $0x10] sm:$0xff] (!%p167_p3)  }
   0x7   : > { %170 = sbr.rel (%p167_p3) target bundleno = 261 (0x105), region = 32  ;;  %p199_p4 = scmp.lt.s32.totalorder (!%p167_p3), %s580_s18, 15  ;;  %650 = vmatprep.subr.bf16.mxu0 (!%p167_p3), %v714_v0  ;;  %674 = vmatprep.subr.bf16.mxu1 (!%p167_p3), %v714_v0  ;;  %v717_v3 = vld [vmem:[%s844_s1 + $0x18] sm:$0xff] (!%p167_p3)   ;;  %v718_v6 = vld [vmem:[%s844_s1 + $0x20] sm:$0xff] (!%p167_p3)   ;;  %v719_v7 = vld [vmem:[%s844_s1 + $0x28] sm:$0xff] (!%p167_p3)  }
   0x8   : > { %651 = vmatpush3.bf16.msra.mxu0 (!%p167_p3), %v714_v0  ;;  %682 = vmatpush3.bf16.msra.mxu1 (!%p167_p3), %v714_v0  ;;  %v720_v8 = vld [vmem:[%s844_s1 + $0x30] sm:$0xff] (!%p167_p3)   ;;  %v721_v9 = vld [vmem:[%s844_s1 + $0x38] sm:$0xff] (!%p167_p3)   ;;  %v596_v12 = vld [vmem:[%s845_s2] ss:$0 sm:$0xff] (!%p167_p3) }
   0x9   : > { %652 = vmatprep.subr.bf16.mxu0 (!%p167_p3), %v715_v1  ;;  %675 = vmatprep.subr.bf16.mxu1 (!%p167_p3), %v715_v1 }
   0xc   : > { %653 = vmatpush3.bf16.msra.mxu0 (!%p167_p3), %v715_v1  ;;  %683 = vmatpush3.bf16.msra.mxu1 (!%p167_p3), %v715_v1 }
   0xd   : > { %654 = vmatprep.subr.bf16.mxu0 (!%p167_p3), %v716_v2  ;;  %676 = vmatprep.subr.bf16.mxu1 (!%p167_p3), %v716_v2 }
   0xe   : > { %s852_s18 = smov (!%p199_p4, %s580_s18), 15 }
   0xf   : > { %s581_s23 = sshll.u32 %s852_s18, 2 }
  0x10   : > { %s805_s26 = scalar_lea.vmem %s843_s0, %s581_s23  ;;  %655 = vmatpush3.bf16.msra.mxu0 %v716_v2  ;;  %684 = vmatpush3.bf16.msra.mxu1 %v716_v2  ;;  %s217_s17 = scalar_lea.vmem %s846_s3, %s581_s23 }
  0x11   : > { %v722_v4 = vld [vmem:[%s805_s26] sm:$0xff]   ;;  %v723_v5 = vld [vmem:[%s805_s26 + $0x10] sm:$0xff]   ;;  %656 = vmatprep.subr.bf16.mxu0 %v717_v3  ;;  %677 = vmatprep.subr.bf16.mxu1 %v717_v3  ;;  %v724_v10 = vld [vmem:[%s805_s26 + $0x8] sm:$0xff]  }
  0x12   : > { %666 = vmatprep.mubr.bf16.mxu0 %v722_v4  ;;  %670 = vmatprep.mubr.bf16.mxu1 %v723_v5  ;;  %v725_v11 = vld [vmem:[%s805_s26 + $0x18] sm:$0xff]  }
  0x14   : > { %657 = vmatpush3.bf16.msra.mxu0 %v717_v3  ;;  %685 = vmatpush3.bf16.msra.mxu1 %v717_v3 }
  0x15   : > { %658 = vmatprep.subr.bf16.mxu0 %v718_v6  ;;  %678 = vmatprep.subr.bf16.mxu1 %v718_v6 }
  0x18   : > { %659 = vmatpush3.bf16.msra.mxu0 %v718_v6  ;;  %686 = vmatpush3.bf16.msra.mxu1 %v718_v6 }
  0x19   : > { %660 = vmatprep.subr.bf16.mxu0 %v719_v7  ;;  %679 = vmatprep.subr.bf16.mxu1 %v719_v7 }
  0x1c   : > { %661 = vmatpush3.bf16.msra.mxu0 %v719_v7  ;;  %687 = vmatpush3.bf16.msra.mxu1 %v719_v7 }
  0x1d   : > { %662 = vmatprep.subr.bf16.mxu0 %v720_v8  ;;  %680 = vmatprep.subr.bf16.mxu1 %v720_v8 }
  0x20   : > { %663 = vmatpush3.bf16.msra.mxu0 %v720_v8  ;;  %688 = vmatpush3.bf16.msra.mxu1 %v720_v8 }
  0x21   : > { %664 = vmatprep.subr.bf16.mxu0 %v721_v9  ;;  %681 = vmatprep.subr.bf16.mxu1 %v721_v9 }
  0x24   : > { %665 = vmatpush3.bf16.msra.mxu0 %v721_v9  ;;  %689 = vmatpush3.bf16.msra.mxu1 %v721_v9 }
  0x27   : > { %667 = vmatmul.mubr.bf16.vlgmr.msra.gmra.mrb[0].mxu0 %v724_v10  ;;  %671 = vmatmul.mubr.bf16.vlgmr.msra.gmra.mrb[0].mxu1 %v725_v11 }
  0xfa   : > { %v668_v13 = vpop.f32.mrb[0].mxu0  ;;  %v672_v14 = vpop.f32.mrb[0].mxu1 }
  0xfb   : > { %v437_v15 = vadd.f32 %v668_v13, %v596_v12  ;;  %v441_v16 = vadd.f32 %v672_v14, %v596_v12  ;;  %v370_v17 = vpop.f32.mrb[1].mxu0  ;;  %v386_v18 = vpop.f32.mrb[1].mxu1 }
  0xfc   : > { %v435_v19 = vadd.f32 %v596_v12, %v370_v17  ;;  %v439_v20 = vadd.f32 %v596_v12, %v386_v18  ;;  %v669_v21 = vpop.f32.mrb[2].mxu0  ;;  %v673_v22 = vpop.f32.mrb[2].mxu1 }
  0xfd   : > { %v438_v23 = vadd.f32 %v669_v21, %v596_v12  ;;  %v442_v24 = vadd.f32 %v673_v22, %v596_v12  ;;  %v373_v25 = vpop.f32.mrb[3].mxu0  ;;  %v389_v26 = vpop.f32.mrb[3].mxu1  ;;  %v445_v29 = vmax.f32 %v437_v15, 0.0  ;;  %v449_v30 = vmax.f32 %v441_v16, 0.0 }
  0xfe   : > { %v436_v27 = vadd.f32 %v596_v12, %v373_v25  ;;  %v440_v28 = vadd.f32 %v596_v12, %v389_v26  ;;  %v443_v33 = vmax.f32 %v435_v19, 0.0  ;;  %v447_v34 = vmax.f32 %v439_v20, 0.0 }
  0xff   : > { %v446_v31 = vmax.f32 %v438_v23, 0.0  ;;  %v450_v32 = vmax.f32 %v442_v24, 0.0 }
 0x100   : > { %v444_v35 = vmax.f32 %v436_v27, 0.0  ;;  %v448_v36 = vmax.f32 %v440_v28, 0.0 }
 0x101   : > { %v623_v37 = vpack.c.bf16 %v446_v31, %v445_v29  ;;  %v633_v38 = vpack.c.bf16 %v450_v32, %v449_v30 }
 0x102   : > { %v618_v39 = vpack.c.bf16 %v444_v35, %v443_v33  ;;  %v628_v40 = vpack.c.bf16 %v448_v36, %v447_v34 }
 0x103   : > { %635 = vst [vmem:[%s217_s17 + $0x8] sm:$0xff] %v623_v37   ;;  %637 = vst [vmem:[%s217_s17 + $0x18] sm:$0xff] %v633_v38  }
 0x104   : > { %619 = vst [vmem:[%s217_s17] sm:$0xff] %v618_v39   ;;  %636 = vst [vmem:[%s217_s17 + $0x10] sm:$0xff] %v628_v40  }
 0x105 PF: > { %s13_s14 = sadd.s32 1, %s748_s14   ;;  %s847_s12 = smov %s744_s13 }
 0x106   : > { %p10_p5 = scmp.ge.s32.totalorder %s13_s14, 4   ;;  %s848_s13 = smov %s850_s15 }
 0x108   :  { %12 = sbr.rel (!%p10_p5) target bundleno = 2 (0x2), region = 73 }

// kernel: basic_block_forward.4
= control target key start
LH: loop header
LB: loop body
LE: loop exit
PB: predicated region body
PF: predicated region fallthrough
CT: control target
= control target key end

     0   :  { %s762_s12 = smov 0   ;;  %s764_s13 = smov 0   ;;  %s835_s0 = inlined_call_operand.vmem [shape: bf16[128,128], index: 0, kind: input, shape index: {}]   ;;  %s836_s1 = inlined_call_operand.vmem [shape: bf16[128,128], index: 1, kind: input, shape index: {}]   ;;  %s837_s2 = inlined_call_operand.vmem [shape: f32[1,128], index: 2, kind: input, shape index: {}]   ;;  %s838_s3 = inlined_call_operand.vmem [shape: bf16[128,128], index: 3, kind: output, shape index: {}]  }
   0x1   :  { %s766_s14 = smov 0  }
   0x2 LB: > { %s25_s15 = sadd.s32 1, %s736_s13  ;;  %p571_p0 = scmp.ge.s32.totalorder %s740_s14, 1  ;;  %s740_s14 = sphi %s766_s14, %s13_s14   ;;  %s736_s13 = sphi %s764_s13, %s840_s13   ;;  %s732_s12 = sphi %s762_s12, %s839_s12  }
   0x3   : > { %p27_p1 = scmp.ge.s32.totalorder %s25_s15, 2  ;;  %p166_p2 = scmp.lt.s32.totalorder %s740_s14, 3 }
   0x5   : > { %s842_s15 = smov (%p27_p1, %s25_s15), 0  ;;  %p167_p3 = pnand %p571_p0, %p166_p2 }
   0x6   : > { %v706_v0 = vld [vmem:[%s836_s1] sm:$0xff] (!%p167_p3)   ;;  %s572_s18 = sshll.u32 (!%p167_p3), %s732_s12, 3  ;;  %v707_v1 = vld [vmem:[%s836_s1 + $0x8] sm:$0xff] (!%p167_p3)   ;;  %v708_v2 = vld [vmem:[%s836_s1 + $0x10] sm:$0xff] (!%p167_p3)  }
   0x7   : > { %170 = sbr.rel (%p167_p3) target bundleno = 259 (0x103), region = 32  ;;  %p199_p4 = scmp.lt.s32.totalorder (!%p167_p3), %s572_s18, 15  ;;  %642 = vmatprep.subr.bf16.mxu0 (!%p167_p3), %v706_v0  ;;  %666 = vmatprep.subr.bf16.mxu1 (!%p167_p3), %v706_v0  ;;  %v709_v3 = vld [vmem:[%s836_s1 + $0x18] sm:$0xff] (!%p167_p3)   ;;  %v710_v6 = vld [vmem:[%s836_s1 + $0x20] sm:$0xff] (!%p167_p3)   ;;  %v711_v7 = vld [vmem:[%s836_s1 + $0x28] sm:$0xff] (!%p167_p3)  }
   0x8   : > { %643 = vmatpush3.bf16.msra.mxu0 (!%p167_p3), %v706_v0  ;;  %674 = vmatpush3.bf16.msra.mxu1 (!%p167_p3), %v706_v0  ;;  %v712_v8 = vld [vmem:[%s836_s1 + $0x30] sm:$0xff] (!%p167_p3)   ;;  %v713_v9 = vld [vmem:[%s836_s1 + $0x38] sm:$0xff] (!%p167_p3)   ;;  %v588_v13 = vld [vmem:[%s837_s2] ss:$0 sm:$0xff] (!%p167_p3) }
   0x9   : > { %644 = vmatprep.subr.bf16.mxu0 (!%p167_p3), %v707_v1  ;;  %667 = vmatprep.subr.bf16.mxu1 (!%p167_p3), %v707_v1 }
   0xc   : > { %645 = vmatpush3.bf16.msra.mxu0 (!%p167_p3), %v707_v1  ;;  %675 = vmatpush3.bf16.msra.mxu1 (!%p167_p3), %v707_v1 }
   0xd   : > { %646 = vmatprep.subr.bf16.mxu0 (!%p167_p3), %v708_v2  ;;  %668 = vmatprep.subr.bf16.mxu1 (!%p167_p3), %v708_v2 }
   0xe   : > { %s844_s18 = smov (!%p199_p4, %s572_s18), 15 }
   0xf   : > { %s573_s23 = sshll.u32 %s844_s18, 2 }
  0x10   : > { %s797_s26 = scalar_lea.vmem %s835_s0, %s573_s23  ;;  %647 = vmatpush3.bf16.msra.mxu0 %v708_v2  ;;  %676 = vmatpush3.bf16.msra.mxu1 %v708_v2  ;;  %s217_s17 = scalar_lea.vmem %s838_s3, %s573_s23 }
  0x11   : > { %v714_v4 = vld [vmem:[%s797_s26] sm:$0xff]   ;;  %v715_v5 = vld [vmem:[%s797_s26 + $0x10] sm:$0xff]   ;;  %648 = vmatprep.subr.bf16.mxu0 %v709_v3  ;;  %669 = vmatprep.subr.bf16.mxu1 %v709_v3  ;;  %v716_v10 = vld [vmem:[%s797_s26 + $0x8] sm:$0xff]  }
  0x12   : > { %658 = vmatprep.mubr.bf16.mxu0 %v714_v4  ;;  %662 = vmatprep.mubr.bf16.mxu1 %v715_v5  ;;  %v717_v11 = vld [vmem:[%s797_s26 + $0x18] sm:$0xff]  }
  0x14   : > { %649 = vmatpush3.bf16.msra.mxu0 %v709_v3  ;;  %677 = vmatpush3.bf16.msra.mxu1 %v709_v3 }
  0x15   : > { %650 = vmatprep.subr.bf16.mxu0 %v710_v6  ;;  %670 = vmatprep.subr.bf16.mxu1 %v710_v6 }
  0x18   : > { %651 = vmatpush3.bf16.msra.mxu0 %v710_v6  ;;  %678 = vmatpush3.bf16.msra.mxu1 %v710_v6 }
  0x19   : > { %652 = vmatprep.subr.bf16.mxu0 %v711_v7  ;;  %671 = vmatprep.subr.bf16.mxu1 %v711_v7 }
  0x1c   : > { %653 = vmatpush3.bf16.msra.mxu0 %v711_v7  ;;  %679 = vmatpush3.bf16.msra.mxu1 %v711_v7 }
  0x1d   : > { %654 = vmatprep.subr.bf16.mxu0 %v712_v8  ;;  %672 = vmatprep.subr.bf16.mxu1 %v712_v8 }
  0x20   : > { %655 = vmatpush3.bf16.msra.mxu0 %v712_v8  ;;  %680 = vmatpush3.bf16.msra.mxu1 %v712_v8 }
  0x21   : > { %656 = vmatprep.subr.bf16.mxu0 %v713_v9  ;;  %673 = vmatprep.subr.bf16.mxu1 %v713_v9 }
  0x24   : > { %657 = vmatpush3.bf16.msra.mxu0 %v713_v9  ;;  %681 = vmatpush3.bf16.msra.mxu1 %v713_v9 }
  0x27   : > { %659 = vmatmul.mubr.bf16.vlgmr.msra.gmra.mrb[0].mxu0 %v716_v10  ;;  %663 = vmatmul.mubr.bf16.vlgmr.msra.gmra.mrb[0].mxu1 %v717_v11 }
  0xfa   : > { %v660_v12 = vpop.f32.mrb[0].mxu0  ;;  %v664_v14 = vpop.f32.mrb[0].mxu1 }
  0xfb   : > { %v370_v15 = vpop.f32.mrb[1].mxu0  ;;  %v386_v16 = vpop.f32.mrb[1].mxu1  ;;  %v437_v19 = vadd.f32 %v660_v12, %v588_v13  ;;  %v441_v20 = vadd.f32 %v664_v14, %v588_v13 }
  0xfc   : > { %v661_v17 = vpop.f32.mrb[2].mxu0  ;;  %v665_v18 = vpop.f32.mrb[2].mxu1  ;;  %v435_v25 = vadd.f32 %v588_v13, %v370_v15  ;;  %v439_v26 = vadd.f32 %v588_v13, %v386_v16 }
  0xfd   : > { %v438_v21 = vadd.f32 %v661_v17, %v588_v13  ;;  %v442_v22 = vadd.f32 %v665_v18, %v588_v13  ;;  %v373_v23 = vpop.f32.mrb[3].mxu0  ;;  %v389_v24 = vpop.f32.mrb[3].mxu1 }
  0xfe   : > { %v436_v27 = vadd.f32 %v588_v13, %v373_v23  ;;  %v440_v28 = vadd.f32 %v588_v13, %v389_v24 }
  0xff   : > { %v615_v29 = vpack.c.bf16 %v438_v21, %v437_v19  ;;  %v625_v30 = vpack.c.bf16 %v442_v22, %v441_v20 }
 0x100   : > { %v610_v31 = vpack.c.bf16 %v436_v27, %v435_v25  ;;  %v620_v32 = vpack.c.bf16 %v440_v28, %v439_v26 }
 0x101   : > { %627 = vst [vmem:[%s217_s17 + $0x8] sm:$0xff] %v615_v29   ;;  %629 = vst [vmem:[%s217_s17 + $0x18] sm:$0xff] %v625_v30  }
 0x102   : > { %611 = vst [vmem:[%s217_s17] sm:$0xff] %v610_v31   ;;  %628 = vst [vmem:[%s217_s17 + $0x10] sm:$0xff] %v620_v32  }
 0x103 PF: > { %s13_s14 = sadd.s32 1, %s740_s14   ;;  %s839_s12 = smov %s736_s13 }
 0x104   : > { %p10_p5 = scmp.ge.s32.totalorder %s13_s14, 4   ;;  %s840_s13 = smov %s842_s15 }
 0x106   :  { %12 = sbr.rel (!%p10_p5) target bundleno = 2 (0x2), region = 73 }

// kernel: basic_block_forward.5
= control target key start
LH: loop header
LB: loop body
LE: loop exit
PB: predicated region body
PF: predicated region fallthrough
CT: control target
= control target key end

     0   :  { %s810_s15 = smov 0   ;;  %s812_s16 = smov 0   ;;  %s887_s0 = inlined_call_operand.vmem [shape: bf16[128,128], index: 0, kind: input, shape index: {}]   ;;  %s888_s1 = inlined_call_operand.vmem [shape: bf16[128,128], index: 1, kind: input, shape index: {}]   ;;  %s889_s2 = inlined_call_operand.vmem [shape: f32[1,128], index: 2, kind: input, shape index: {}]   ;;  %s890_s3 = inlined_call_operand.vmem [shape: bf16[128,128], index: 3, kind: input, shape index: {}]   ;;  %s891_s4 = inlined_call_operand.vmem [shape: f32[128,128], index: 4, kind: output, shape index: {}]  }
   0x1   :  { %s814_s17 = smov 0  }
   0x2 LB: > { %s26_s18 = sadd.s32 1, %s779_s16  ;;  %p632_p0 = scmp.ge.s32.totalorder %s783_s17, 1  ;;  %s783_s17 = sphi %s814_s17, %s14_s17   ;;  %s779_s16 = sphi %s812_s16, %s893_s16   ;;  %s775_s15 = sphi %s810_s15, %s892_s15  }
   0x3   : > { %p28_p1 = scmp.ge.s32.totalorder %s26_s18, 2  ;;  %p202_p2 = scmp.lt.s32.totalorder %s783_s17, 3 }
   0x5   : > { %s895_s18 = smov (%p28_p1, %s26_s18), 0  ;;  %p203_p3 = pnand %p632_p0, %p202_p2 }
   0x6   : > { %v749_v0 = vld [vmem:[%s888_s1] sm:$0xff] (!%p203_p3)   ;;  %s633_s21 = sshll.u32 (!%p203_p3), %s775_s15, 3  ;;  %v750_v1 = vld [vmem:[%s888_s1 + $0x8] sm:$0xff] (!%p203_p3)   ;;  %v751_v2 = vld [vmem:[%s888_s1 + $0x10] sm:$0xff] (!%p203_p3)  }
   0x7   : > { %206 = sbr.rel (%p203_p3) target bundleno = 261 (0x105), region = 36  ;;  %p242_p4 = scmp.lt.s32.totalorder (!%p203_p3), %s633_s21, 15  ;;  %685 = vmatprep.subr.bf16.mxu0 (!%p203_p3), %v749_v0  ;;  %709 = vmatprep.subr.bf16.mxu1 (!%p203_p3), %v749_v0  ;;  %v752_v3 = vld [vmem:[%s888_s1 + $0x18] sm:$0xff] (!%p203_p3)   ;;  %v753_v6 = vld [vmem:[%s888_s1 + $0x20] sm:$0xff] (!%p203_p3)   ;;  %v754_v7 = vld [vmem:[%s888_s1 + $0x28] sm:$0xff] (!%p203_p3)  }
   0x8   : > { %686 = vmatpush3.bf16.msra.mxu0 (!%p203_p3), %v749_v0  ;;  %717 = vmatpush3.bf16.msra.mxu1 (!%p203_p3), %v749_v0  ;;  %v755_v8 = vld [vmem:[%s888_s1 + $0x30] sm:$0xff] (!%p203_p3)   ;;  %v756_v9 = vld [vmem:[%s888_s1 + $0x38] sm:$0xff] (!%p203_p3)   ;;  %v651_v16 = vld [vmem:[%s889_s2] ss:$0 sm:$0xff] (!%p203_p3) }
   0x9   : > { %687 = vmatprep.subr.bf16.mxu0 (!%p203_p3), %v750_v1  ;;  %710 = vmatprep.subr.bf16.mxu1 (!%p203_p3), %v750_v1 }
   0xc   : > { %688 = vmatpush3.bf16.msra.mxu0 (!%p203_p3), %v750_v1  ;;  %718 = vmatpush3.bf16.msra.mxu1 (!%p203_p3), %v750_v1 }
   0xd   : > { %689 = vmatprep.subr.bf16.mxu0 (!%p203_p3), %v751_v2  ;;  %711 = vmatprep.subr.bf16.mxu1 (!%p203_p3), %v751_v2 }
   0xe   : > { %s897_s21 = smov (!%p242_p4, %s633_s21), 15 }
   0xf   : > { %s634_s26 = sshll.u32 %s897_s21, 2  ;;  %s638_s23 = sshll.u32 %s897_s21, 3 }
  0x10   : > { %s845_s29 = scalar_lea.vmem %s887_s0, %s634_s26  ;;  %690 = vmatpush3.bf16.msra.mxu0 %v751_v2  ;;  %719 = vmatpush3.bf16.msra.mxu1 %v751_v2  ;;  %s260_s19 = scalar_lea.vmem %s890_s3, %s634_s26 }
  0x11   : > { %v757_v4 = vld [vmem:[%s845_s29] sm:$0xff]   ;;  %v758_v5 = vld [vmem:[%s845_s29 + $0x10] sm:$0xff]   ;;  %691 = vmatprep.subr.bf16.mxu0 %v752_v3  ;;  %712 = vmatprep.subr.bf16.mxu1 %v752_v3  ;;  %v759_v10 = vld [vmem:[%s845_s29 + $0x8] sm:$0xff]   ;;  %s266_s25 = scalar_lea.vmem %s891_s4, %s638_s23 }
  0x12   : > { %701 = vmatprep.mubr.bf16.mxu0 %v757_v4  ;;  %705 = vmatprep.mubr.bf16.mxu1 %v758_v5  ;;  %v760_v11 = vld [vmem:[%s845_s29 + $0x18] sm:$0xff]   ;;  %v670_v12 = vld [vmem:[%s260_s19 + $0x8] sm:$0xff]   ;;  %v655_v14 = vld [vmem:[%s260_s19] sm:$0xff]  }
  0x13   : > { %v672_v13 = vld [vmem:[%s260_s19 + $0x18] sm:$0xff]   ;;  %v671_v15 = vld [vmem:[%s260_s19 + $0x10] sm:$0xff]   ;;  %v660_v17 = vunpack.c.l.bf16 %v670_v12  ;;  %v656_v21 = vunpack.c.l.bf16 %v655_v14  ;;  %v661_v27 = vunpack.c.h.bf16 %v670_v12  ;;  %v657_v33 = vunpack.c.h.bf16 %v655_v14 }
  0x14   : > { %692 = vmatpush3.bf16.msra.mxu0 %v752_v3  ;;  %720 = vmatpush3.bf16.msra.mxu1 %v752_v3  ;;  %v668_v18 = vunpack.c.l.bf16 %v672_v13  ;;  %v664_v22 = vunpack.c.l.bf16 %v671_v15  ;;  %v669_v28 = vunpack.c.h.bf16 %v672_v13  ;;  %v665_v34 = vunpack.c.h.bf16 %v671_v15 }
  0x15   : > { %693 = vmatprep.subr.bf16.mxu0 %v753_v6  ;;  %713 = vmatprep.subr.bf16.mxu1 %v753_v6 }
  0x18   : > { %694 = vmatpush3.bf16.msra.mxu0 %v753_v6  ;;  %721 = vmatpush3.bf16.msra.mxu1 %v753_v6 }
  0x19   : > { %695 = vmatprep.subr.bf16.mxu0 %v754_v7  ;;  %714 = vmatprep.subr.bf16.mxu1 %v754_v7 }
  0x1c   : > { %696 = vmatpush3.bf16.msra.mxu0 %v754_v7  ;;  %722 = vmatpush3.bf16.msra.mxu1 %v754_v7 }
  0x1d   : > { %697 = vmatprep.subr.bf16.mxu0 %v755_v8  ;;  %715 = vmatprep.subr.bf16.mxu1 %v755_v8 }
  0x20   : > { %698 = vmatpush3.bf16.msra.mxu0 %v755_v8  ;;  %723 = vmatpush3.bf16.msra.mxu1 %v755_v8 }
  0x21   : > { %699 = vmatprep.subr.bf16.mxu0 %v756_v9  ;;  %716 = vmatprep.subr.bf16.mxu1 %v756_v9 }
  0x24   : > { %700 = vmatpush3.bf16.msra.mxu0 %v756_v9  ;;  %724 = vmatpush3.bf16.msra.mxu1 %v756_v9 }
  0x27   : > { %702 = vmatmul.mubr.bf16.vlgmr.msra.gmra.mrb[0].mxu0 %v759_v10  ;;  %706 = vmatmul.mubr.bf16.vlgmr.msra.gmra.mrb[0].mxu1 %v760_v11 }
  0xfa   : > { %v703_v19 = vpop.f32.mrb[0].mxu0  ;;  %v707_v20 = vpop.f32.mrb[0].mxu1 }
  0xfb   : > { %v486_v23 = vadd.f32 %v703_v19, %v651_v16  ;;  %v490_v24 = vadd.f32 %v707_v20, %v651_v16  ;;  %v419_v25 = vpop.f32.mrb[1].mxu0  ;;  %v435_v26 = vpop.f32.mrb[1].mxu1 }
  0xfc   : > { %v484_v29 = vadd.f32 %v651_v16, %v419_v25  ;;  %v488_v30 = vadd.f32 %v651_v16, %v435_v26  ;;  %v704_v31 = vpop.f32.mrb[2].mxu0  ;;  %v708_v32 = vpop.f32.mrb[2].mxu1 }
  0xfd   : > { %v510_v35 = vadd.f32 %v660_v17, %v486_v23  ;;  %v514_v36 = vadd.f32 %v668_v18, %v490_v24  ;;  %v487_v37 = vadd.f32 %v704_v31, %v651_v16  ;;  %v491_v38 = vadd.f32 %v708_v32, %v651_v16  ;;  %v422_v39 = vpop.f32.mrb[3].mxu0  ;;  %v438_v40 = vpop.f32.mrb[3].mxu1 }
  0xfe   : > { %v508_v41 = vadd.f32 %v656_v21, %v484_v29  ;;  %v512_v42 = vadd.f32 %v664_v22, %v488_v30  ;;  %v485_v43 = vadd.f32 %v651_v16, %v422_v39  ;;  %v489_v44 = vadd.f32 %v651_v16, %v438_v40 }
  0xff   : > { %v518_v45 = vmax.f32 %v510_v35, 0.0  ;;  %v522_v46 = vmax.f32 %v514_v36, 0.0  ;;  %v511_v47 = vadd.f32 %v661_v27, %v487_v37  ;;  %v515_v48 = vadd.f32 %v669_v28, %v491_v38 }
 0x100   : > { %v516_v49 = vmax.f32 %v508_v41, 0.0  ;;  %v520_v50 = vmax.f32 %v512_v42, 0.0  ;;  %v509_v51 = vadd.f32 %v657_v33, %v485_v43  ;;  %v513_v52 = vadd.f32 %v665_v34, %v489_v44 }
 0x101   : > { %526 = vst [vmem:[%s266_s25 + $0x10] sm:$0xff] %v518_v45  ;;  %530 = vst [vmem:[%s266_s25 + $0x30] sm:$0xff] %v522_v46  ;;  %v519_v53 = vmax.f32 %v511_v47, 0.0  ;;  %v523_v54 = vmax.f32 %v515_v48, 0.0 }
 0x102   : > { %524 = vst [vmem:[%s266_s25] sm:$0xff] %v516_v49  ;;  %528 = vst [vmem:[%s266_s25 + $0x20] sm:$0xff] %v520_v50  ;;  %v517_v55 = vmax.f32 %v509_v51, 0.0  ;;  %v521_v56 = vmax.f32 %v513_v52, 0.0 }
 0x103   : > { %527 = vst [vmem:[%s266_s25 + $0x18] sm:$0xff] %v519_v53  ;;  %531 = vst [vmem:[%s266_s25 + $0x38] sm:$0xff] %v523_v54 }
 0x104   : > { %525 = vst [vmem:[%s266_s25 + $0x8] sm:$0xff] %v517_v55  ;;  %529 = vst [vmem:[%s266_s25 + $0x28] sm:$0xff] %v521_v56 }
 0x105 PF: > { %s14_s17 = sadd.s32 1, %s783_s17   ;;  %s892_s15 = smov %s779_s16 }
 0x106   : > { %p11_p5 = scmp.ge.s32.totalorder %s14_s17, 4   ;;  %s893_s16 = smov %s895_s18 }
 0x108   :  { %13 = sbr.rel (!%p11_p5) target bundleno = 2 (0x2), region = 80 }

</bundles_post_ra>
